<compile_context>
chip_gen: v5e
topology: v5e:2x2
jax: 0.10.0
libtpu: 0.0.40
codegen_flags: <defaults>
</compile_context>

<pallas_src>
import jax
import jax.numpy as jnp
from jax.experimental import pallas as pl
from jax.experimental.pallas import tpu as pltpu


def _tc_per_chip():
    """Best-effort TensorCore-per-chip count (v7x has 2; v5e/v6e have 1)."""
    try:
        kind = str(jax.devices()[0].device_kind).lower()
    except Exception:
        return 1
    return 2 if ("v7" in kind or "tpu7" in kind) else 1


def _make_kernel(NB, C_in, C_out, H, W, KH, KW, HW, K, PAD):
    def conv_relu_kernel(x_ref, w_ref, b_ref, o_ref):
        # x_ref: (NB, C_in, HW)  f32   flattened input block (NB images)
        # w_ref: (C_out, K)      bf16  k = (kh*KW + kw)*C_in + ci
        # b_ref: (C_out, 1)      f32
        # o_ref: (NB, C_out, HW) f32
        lane_pad = jnp.zeros((C_in, PAD), jnp.float32) if PAD else None  # hoisted
        cols = []
        for n in range(NB):
            x_img = x_ref[n]                                   # (C_in, HW) f32
            x_pad = (jnp.concatenate([x_img, lane_pad], axis=1)
                     if PAD else x_img)                        # (C_in, HW+PAD)
            rows = []
            for kh in range(KH):
                for kw in range(KW):
                    off = kh * W + kw
                    rows.append(x_pad[:, off:off + HW])        # (C_in, HW) f32
            cols.append(jnp.concatenate(rows, axis=0))         # (K, HW) f32
        patches = cols[0] if NB == 1 else jnp.concatenate(cols, axis=1)

        # Single MXU pass for the whole block: (C_out, K) @ (K, NB*HW).
        # Cast to bf16 exactly once, on the assembled patch value.
        acc = jnp.dot(w_ref[...], patches.astype(jnp.bfloat16),
                      preferred_element_type=jnp.float32)      # (C_out, NB*HW)
        acc = jnp.maximum(acc + b_ref[...], 0.0)               # bias + ReLU

        for n in range(NB):  # lane-dense, lane-tile-aligned full stores
            o_ref[n] = acc[:, n * HW:(n + 1) * HW].astype(o_ref.dtype)

    return conv_relu_kernel


def prepare_params(w, b):
    """One-time weight/bias repack for the kernel (hoisted out of the hot path)."""
    C_out, C_in, KH, KW = w.shape
    w_mat = jnp.transpose(w, (0, 2, 3, 1)).reshape(
        C_out, KH * KW * C_in).astype(jnp.bfloat16)
    b_col = b.reshape(C_out, 1).astype(jnp.float32)
    return w_mat, b_col, (KH, KW)


def lenet_conv_pool_forward(x, w_mat, b_col, kernel_hw):
    """relu(conv2d(x, w, b)), stride 1, no padding (PyTorch Conv2d defaults).

    x: (N, C_in, H, W) f32; w_mat: prepacked (C_out, KH*KW*C_in) bf16;
    b_col: (C_out, 1) f32; kernel_hw: static (KH, KW).
    returns (N, C_out, H_out, W_out) f32
    """
    KH, KW = kernel_hw
    N, C_in, H, W = x.shape
    C_out = w_mat.shape[0]
    K = KH * KW * C_in
    assert w_mat.shape == (C_out, K)
    H_out, W_out = H - KH + 1, W - KW + 1
    HW = H * W

    # Register lane padding so every shifted slice (max offset (KH-1)*W+(KW-1))
    # stays in bounds; built inside the kernel, not in HBM.
    need = (KH - 1) * W + (KW - 1)
    PAD = ((need + 127) // 128) * 128 if need else 0

    # Split the batch onto the grid only where it buys a second TensorCore
    # (v7x). On single-TC chips one step avoids per-step pipeline overhead.
    # TODO(synk): for large training batches, tile N more finely on the grid
    # (per-image blocks) to get DMA/compute pipelining and respect the smaller
    # v7x VMEM ceiling.
    cores = _tc_per_chip()
    nblocks = cores if (cores > 1 and N % cores == 0) else 1
    NB = N // nblocks

    kernel = _make_kernel(NB, C_in, C_out, H, W, KH, KW, HW, K, PAD)

    x_flat = x.reshape(N, C_in, HW)  # minor-dim collapse: layout-free

    out_full = pl.pallas_call(
        kernel,
        out_shape=jax.ShapeDtypeStruct((N, C_out, HW), x.dtype),
        grid_spec=pltpu.PrefetchScalarGridSpec(
            num_scalar_prefetch=0,
            grid=(nblocks,),
            in_specs=[
                pl.BlockSpec((NB, C_in, HW), lambda i: (i, 0, 0)),
                pl.BlockSpec((C_out, K), lambda i: (0, 0)),
                pl.BlockSpec((C_out, 1), lambda i: (0, 0)),
            ],
            out_specs=pl.BlockSpec((NB, C_out, HW), lambda i: (i, 0, 0)),
        ),
        compiler_params=pltpu.CompilerParams(
            dimension_semantics=("parallel",)),
    )(x_flat, w_mat, b_col)

    # Full-grid conv computed; keep only the valid H_out x W_out region.
    # Kept in the wrapper: fusing the crop in-kernel would trade one tiny
    # fused XLA slice for an in-kernel lane relayout + 14-lane masked stores.
    return out_full.reshape(N, C_out, H, W)[:, :, :H_out, :W_out]


def _reference(x, w, b):
    y = jax.lax.conv_general_dilated(
        x, w, window_strides=(1, 1), padding="VALID",
        dimension_numbers=("NCHW", "OIHW", "NCHW"))
    return jnp.maximum(y + b[None, :, None, None], 0.0)


if __name__ == "__main__":
    # Shapes consistent with the module: Conv2d(4, 8, kernel_size=3).
    N, C_in, C_out, H, W, KH, KW = 2, 4, 8, 16, 16, 3, 3

    key = jax.random.PRNGKey(0)
    kx, kw_, kb = jax.random.split(key, 3)

    x = jax.random.normal(kx, (N, C_in, H, W), dtype=jnp.float32)
    fan_in = C_in * KH * KW
    w = jax.random.uniform(kw_, (C_out, C_in, KH, KW), dtype=jnp.float32,
                           minval=-1.0, maxval=1.0) / jnp.sqrt(fan_in)
    b = jax.random.uniform(kb, (C_out,), dtype=jnp.float32,
                           minval=-1.0, maxval=1.0) / jnp.sqrt(fan_in)

    # One-time parameter repack (layer init), outside the jitted per-call path.
    w_mat, b_col, kernel_hw = prepare_params(w, b)

    fwd = jax.jit(lenet_conv_pool_forward, static_argnums=(3,))
    out = jax.block_until_ready(fwd(x, w_mat, b_col, kernel_hw))

    ref = jax.block_until_ready(_reference(x, w, b))
    assert out.shape == (N, C_out, H - KH + 1, W - KW + 1)
    # bf16 MXU inputs (f32 accumulation) -> relaxed tolerance vs f32 reference.
    assert jnp.allclose(out, ref, atol=2e-2, rtol=2e-2), "mismatch vs reference"

    print("KERNEL_OK")
</pallas_src>

<mosaic_0001>
module attributes {stable_mosaic.version = 11 : i64} {
  func.func @conv_relu_kernel(%arg0: i32, %arg1: memref<2x4x256xf32, #tpu.memory_space<vmem>>, %arg2: memref<8x36xbf16, #tpu.memory_space<vmem>>, %arg3: memref<8x1xf32, #tpu.memory_space<vmem>>, %arg4: memref<2x8x256xf32, #tpu.memory_space<vmem>>) attributes {dimension_semantics = [#tpu.dimension_semantics<parallel>], iteration_bounds = array<i64: 1>, scalar_prefetch = 0 : i64, scratch_operands = 0 : i64, tpu.core_type = #tpu.core_type<tc>, window_params = [{transform_indices = @transform_0, window_bounds = array<i64: 2, 4, 256>}, {pipeline_mode = #tpu.pipeline_mode<synchronous>, transform_indices = @transform_1, window_bounds = array<i64: 8, 36>}, {pipeline_mode = #tpu.pipeline_mode<synchronous>, transform_indices = @transform_2, window_bounds = array<i64: 8, 1>}, {transform_indices = @transform_3, window_bounds = array<i64: 2, 8, 256>}]} {
    %cst = arith.constant 0.000000e+00 : f32
    %0 = vector.broadcast %cst : f32 to vector<4x128xf32>
    %c0 = arith.constant 0 : index
    %c0_0 = arith.constant 0 : index
    %c0_1 = arith.constant 0 : index
    %1 = vector.load %arg1[%c0, %c0_0, %c0_1] : memref<2x4x256xf32, #tpu.memory_space<vmem>>, vector<1x4x256xf32>
    %2 = vector.shape_cast %1 : vector<1x4x256xf32> to vector<4x256xf32>
    %3 = tpu.concatenate %2, %0 in 1 : vector<4x256xf32>, vector<4x128xf32> -> vector<4x384xf32>
    %4 = vector.extract_strided_slice %3 {offsets = [0, 0], sizes = [4, 256], strides = [1, 1]} : vector<4x384xf32> to vector<4x256xf32>
    %5 = vector.extract_strided_slice %3 {offsets = [0, 1], sizes = [4, 256], strides = [1, 1]} : vector<4x384xf32> to vector<4x256xf32>
    %6 = vector.extract_strided_slice %3 {offsets = [0, 2], sizes = [4, 256], strides = [1, 1]} : vector<4x384xf32> to vector<4x256xf32>
    %7 = vector.extract_strided_slice %3 {offsets = [0, 16], sizes = [4, 256], strides = [1, 1]} : vector<4x384xf32> to vector<4x256xf32>
    %8 = vector.extract_strided_slice %3 {offsets = [0, 17], sizes = [4, 256], strides = [1, 1]} : vector<4x384xf32> to vector<4x256xf32>
    %9 = vector.extract_strided_slice %3 {offsets = [0, 18], sizes = [4, 256], strides = [1, 1]} : vector<4x384xf32> to vector<4x256xf32>
    %10 = vector.extract_strided_slice %3 {offsets = [0, 32], sizes = [4, 256], strides = [1, 1]} : vector<4x384xf32> to vector<4x256xf32>
    %11 = vector.extract_strided_slice %3 {offsets = [0, 33], sizes = [4, 256], strides = [1, 1]} : vector<4x384xf32> to vector<4x256xf32>
    %12 = vector.extract_strided_slice %3 {offsets = [0, 34], sizes = [4, 256], strides = [1, 1]} : vector<4x384xf32> to vector<4x256xf32>
    %13 = tpu.concatenate %4, %5, %6, %7, %8, %9, %10, %11, %12 in 0 : vector<4x256xf32>, vector<4x256xf32>, vector<4x256xf32>, vector<4x256xf32>, vector<4x256xf32>, vector<4x256xf32>, vector<4x256xf32>, vector<4x256xf32>, vector<4x256xf32> -> vector<36x256xf32>
    %c1 = arith.constant 1 : index
    %c0_2 = arith.constant 0 : index
    %c0_3 = arith.constant 0 : index
    %14 = vector.load %arg1[%c1, %c0_2, %c0_3] : memref<2x4x256xf32, #tpu.memory_space<vmem>>, vector<1x4x256xf32>
    %15 = vector.shape_cast %14 : vector<1x4x256xf32> to vector<4x256xf32>
    %16 = tpu.concatenate %15, %0 in 1 : vector<4x256xf32>, vector<4x128xf32> -> vector<4x384xf32>
    %17 = vector.extract_strided_slice %16 {offsets = [0, 0], sizes = [4, 256], strides = [1, 1]} : vector<4x384xf32> to vector<4x256xf32>
    %18 = vector.extract_strided_slice %16 {offsets = [0, 1], sizes = [4, 256], strides = [1, 1]} : vector<4x384xf32> to vector<4x256xf32>
    %19 = vector.extract_strided_slice %16 {offsets = [0, 2], sizes = [4, 256], strides = [1, 1]} : vector<4x384xf32> to vector<4x256xf32>
    %20 = vector.extract_strided_slice %16 {offsets = [0, 16], sizes = [4, 256], strides = [1, 1]} : vector<4x384xf32> to vector<4x256xf32>
    %21 = vector.extract_strided_slice %16 {offsets = [0, 17], sizes = [4, 256], strides = [1, 1]} : vector<4x384xf32> to vector<4x256xf32>
    %22 = vector.extract_strided_slice %16 {offsets = [0, 18], sizes = [4, 256], strides = [1, 1]} : vector<4x384xf32> to vector<4x256xf32>
    %23 = vector.extract_strided_slice %16 {offsets = [0, 32], sizes = [4, 256], strides = [1, 1]} : vector<4x384xf32> to vector<4x256xf32>
    %24 = vector.extract_strided_slice %16 {offsets = [0, 33], sizes = [4, 256], strides = [1, 1]} : vector<4x384xf32> to vector<4x256xf32>
    %25 = vector.extract_strided_slice %16 {offsets = [0, 34], sizes = [4, 256], strides = [1, 1]} : vector<4x384xf32> to vector<4x256xf32>
    %26 = tpu.concatenate %17, %18, %19, %20, %21, %22, %23, %24, %25 in 0 : vector<4x256xf32>, vector<4x256xf32>, vector<4x256xf32>, vector<4x256xf32>, vector<4x256xf32>, vector<4x256xf32>, vector<4x256xf32>, vector<4x256xf32>, vector<4x256xf32> -> vector<36x256xf32>
    %27 = tpu.concatenate %13, %26 in 1 : vector<36x256xf32>, vector<36x256xf32> -> vector<36x512xf32>
    %c0_4 = arith.constant 0 : index
    %c0_5 = arith.constant 0 : index
    %28 = vector.load %arg2[%c0_4, %c0_5] : memref<8x36xbf16, #tpu.memory_space<vmem>>, vector<8x36xbf16>
    %29 = arith.truncf %27 : vector<36x512xf32> to vector<36x512xbf16>
    %cst_6 = arith.constant dense<0.000000e+00> : vector<8x512xf32>
    %30 = tpu.matmul %28, %29, %cst_6 {dimension_numbers = #tpu.dot_dimension_numbers<[1], [0], [0], [1], [0, 0, 1, 1], [], []>} : vector<8x36xbf16>, vector<36x512xbf16>, vector<8x512xf32> -> vector<8x512xf32>
    %c0_7 = arith.constant 0 : index
    %c0_8 = arith.constant 0 : index
    %31 = vector.load %arg3[%c0_7, %c0_8] : memref<8x1xf32, #tpu.memory_space<vmem>>, vector<8x1xf32>
    %32 = vector.broadcast %31 : vector<8x1xf32> to vector<8x512xf32>
    %33 = arith.addf %30, %32 : vector<8x512xf32>
    %cst_9 = arith.constant 0.000000e+00 : f32
    %34 = vector.broadcast %cst_9 : f32 to vector<8x512xf32>
    %35 = arith.maximumf %33, %34 : vector<8x512xf32>
    %36 = vector.extract_strided_slice %35 {offsets = [0, 0], sizes = [8, 256], strides = [1, 1]} : vector<8x512xf32> to vector<8x256xf32>
    %c0_10 = arith.constant 0 : index
    %c0_11 = arith.constant 0 : index
    %c0_12 = arith.constant 0 : index
    %37 = vector.load %arg4[%c0_10, %c0_11, %c0_12] : memref<2x8x256xf32, #tpu.memory_space<vmem>>, vector<1x8x256xf32>
    %38 = vector.shape_cast %37 : vector<1x8x256xf32> to vector<8x256xf32>
    %39 = vector.shape_cast %36 : vector<8x256xf32> to vector<1x8x256xf32>
    tpu.vector_store %arg4[%c0_10, %c0_11, %c0_12], %39 {strides = array<i32>} : memref<2x8x256xf32, #tpu.memory_space<vmem>>, vector<1x8x256xf32>,
    %40 = vector.extract_strided_slice %35 {offsets = [0, 256], sizes = [8, 256], strides = [1, 1]} : vector<8x512xf32> to vector<8x256xf32>
    %c1_13 = arith.constant 1 : index
    %c0_14 = arith.constant 0 : index
    %c0_15 = arith.constant 0 : index
    %41 = vector.load %arg4[%c1_13, %c0_14, %c0_15] : memref<2x8x256xf32, #tpu.memory_space<vmem>>, vector<1x8x256xf32>
    %42 = vector.shape_cast %41 : vector<1x8x256xf32> to vector<8x256xf32>
    %43 = vector.shape_cast %40 : vector<8x256xf32> to vector<1x8x256xf32>
    tpu.vector_store %arg4[%c1_13, %c0_14, %c0_15], %43 {strides = array<i32>} : memref<2x8x256xf32, #tpu.memory_space<vmem>>, vector<1x8x256xf32>,
    return
  }
  func.func @transform_0(%arg0: i32) -> (i32, i32, i32) {
    %c0_i32 = arith.constant 0 : i32
    %c0_i32_0 = arith.constant 0 : i32
    %c0_i32_1 = arith.constant 0 : i32
    return %arg0, %c0_i32, %c0_i32_0 : i32, i32, i32
  }
  func.func @transform_1(%arg0: i32) -> (i32, i32) {
    %c0_i32 = arith.constant 0 : i32
    %c0_i32_0 = arith.constant 0 : i32
    %c0_i32_1 = arith.constant 0 : i32
    return %c0_i32, %c0_i32_0 : i32, i32
  }
  func.func @transform_2(%arg0: i32) -> (i32, i32) {
    %c0_i32 = arith.constant 0 : i32
    %c0_i32_0 = arith.constant 0 : i32
    %c0_i32_1 = arith.constant 0 : i32
    return %c0_i32, %c0_i32_0 : i32, i32
  }
  func.func @transform_3(%arg0: i32) -> (i32, i32, i32) {
    %c0_i32 = arith.constant 0 : i32
    %c0_i32_0 = arith.constant 0 : i32
    %c0_i32_1 = arith.constant 0 : i32
    return %arg0, %c0_i32, %c0_i32_0 : i32, i32, i32
  }
}

</mosaic_0001>

<bundles_post_ra>
// kernel: lenet_conv_pool_forward.1
= control target key start
LH: loop header
LB: loop body
LE: loop exit
PB: predicated region body
PF: predicated region fallthrough
CT: control target
= control target key end

     0   :  { %v404_v5 = vmov 0.0   ;;  %s405_s16 = smov 96   ;;  %s406_s17 = smov 111   ;;  %vm109_vm0 = vcmask 769024   ;;  %vm228_vm1 = vcmask 1041408   ;;  %vm76_vm2 = vcmask 900096   ;;  %s608_s0 = inlined_call_operand.vmem [shape: f32[2,4,256], index: 0, kind: input, shape index: {}]   ;;  %s609_s2 = inlined_call_operand.vmem [shape: f32[8,1], index: 2, kind: input, shape index: {}]   ;;  %s610_s1 = inlined_call_operand.vmem [shape: bf16[8,36], index: 1, kind: input, shape index: {}]   ;;  %s611_s3 = inlined_call_operand.vmem [shape: f32[2,8,256], index: 3, kind: output, shape index: {}]  }
   0x1   :  { %v15_v0 = vld [vmem:[%s608_s0] sm:$0xff]  ;;  %v306_v1 = vld [vmem:[%s608_s0 + $0x8] sm:$0xff]  ;;  %v25_v7 = vrot.slane %v404_v5, 4  ;;  %s407_s18 = smov 94   ;;  %s408_s0 = smov 110   ;;  %vm87_vm3 = vcmask 785408  }
   0x2   :  { %17 = vst [vmem:[#allocation1] ss:$2 sm:$0xff] %v15_v0  ;;  %s409_s19 = smov 95   ;;  %s410_s20 = smov 127   ;;  %vm65_vm4 = vcmask 908288   ;;  %vm114_vm5 = vcmask 1043456  }
   0x3   :  { %s411_s21 = smov 112   ;;  %s412_s22 = smov 126   ;;  %vm98_vm6 = vcmask 777216   ;;  %vm32_vm7 = vcmask 1039360   ;;  %vm43_vm8 = vcmask 1031168   ;;  %vm54_vm9 = vcmask 916480  }
   0x4   :  { %vm224_vm10 = vcmask 293888  }
   0x9   :  { %v440_v2 = vld.sshfl [vmem:[#allocation1] sm:$0xff pattern:$0x75316420]  ;;  %v442_v3 = vld.sshfl [vmem:[#allocation1 + $0x8] sm:$0xff pattern:$0x75316420] }
   0xa   :  { %126 = vst [vmem:[#allocation1] ss:$2 sm:$0xff] %v306_v1  ;;  %v23_v12 = vrot.slane %v440_v2, 4  ;;  %v24_v15 = vrot.slane %v442_v3, 4 }
   0xc   :  { %v398_v16 = vpack.i.bf16 %v24_v15, %v23_v12 }
  0x11   :  { %v444_v4 = vld.sshfl [vmem:[#allocation1] sm:$0xff pattern:$0x75316420]  ;;  %v449_v9 = vld.sshfl [vmem:[#allocation1 + $0x8] sm:$0xff pattern:$0x75316420] }
  0x12   :  { %v338_v6 = vpack.i.bf16 %v444_v4, %v404_v5  ;;  %v131_v8 = vrot.slane %v444_v4, 4  ;;  %v348_v10 = vpack.i.bf16 %v440_v2, %v449_v9  ;;  %v132_v13 = vrot.slane %v449_v9, 4 }
  0x14   :  { %339 = vrot.lane.b32.xlu2 %v338_v6, %s405_s16  ;;  %334 = vrot.lane.b32.xlu1 %v338_v6, %s406_s17  ;;  %v353_v11 = vpack.i.bf16 %v131_v8, %v25_v7  ;;  %v363_v14 = vpack.i.bf16 %v23_v12, %v132_v13 }
  0x15   :  { %324 = vrot.lane.b32.xlu0 %v338_v6, %s407_s18 }
  0x1c   :  { %349 = vrot.lane.b32.xlu2 %v348_v10, %s405_s16  ;;  %354 = vrot.lane.b32.xlu1 %v353_v11, %s408_s0 }
  0x1d   :  { %329 = vrot.lane.b32.xlu0 %v348_v10, %s407_s18 }
  0x24   :  { %359 = vrot.lane.b32.xlu2 %v353_v11, %s409_s19  ;;  %364 = vrot.lane.b32.xlu1 %v363_v14, %s408_s0 }
  0x25   :  { %344 = vrot.lane.b32.xlu0 %v348_v10, %s406_s17 }
  0x2c   :  { %374 = vrot.lane.b32.xlu2 %v353_v11, %s410_s20  ;;  %105 = vrot.lane.b32.xlu1 %v442_v3, %s407_s18 }
  0x2d   :  { %369 = vrot.lane.b32.xlu0 %v363_v14, %s409_s19 }
  0x34   :  { %389 = vrot.lane.b32.xlu2 %v363_v14, %s410_s20  ;;  %384 = vrot.lane.b32.xlu1 %v353_v11, %s411_s21 }
  0x35   :  { %379 = vrot.lane.b32.xlu0 %v338_v6, %s412_s22 }
  0x3c   :  { %61 = vrot.lane.b32.xlu2 %v442_v3, %s406_s17  ;;  %151 = vrot.lane.b32.xlu1 %v132_v13, %s411_s21 }
  0x3d   :  { %394 = vrot.lane.b32.xlu0 %v348_v10, %s412_s22 }
  0x44   :  { %94 = vrot.lane.b32.xlu2 %v24_v15, %s409_s19  ;;  %83 = vrot.lane.b32.xlu1 %v442_v3, %s405_s16 }
  0x45   :  { %72 = vrot.lane.b32.xlu0 %v24_v15, %s408_s0 }
  0x4c   :  { %399 = vrot.lane.b32.xlu2 %v398_v16, %s411_s21  ;;  %39 = vrot.lane.b32.xlu1 %v442_v3, %s412_s22  ;;  %v413_v16 = vmov 0  }
  0x4d   :  { %28 = vrot.lane.b32.xlu0 %v24_v15, %s410_s20  ;;  %v218_v15 = vld [vmem:[%s609_s2] sm:$0xff] }
  0x4e   :  { %403 = vset.pattern.permute.xlu0 %v413_v16 }
  0x55   :  { %221 = vperm.xlu0 %403, %v218_v15  }
  0x6e   :  { %v462_v17 = vpop.permute.xlu2 %339 }
  0x6f   :  { %v342_v39 = vunpack.i.h.bf16 %v462_v17  ;;  %v341_v40 = vunpack.i.l.bf16 %v462_v17 }
  0x76   :  { %v464_v18 = vpop.permute.xlu2 %349 }
  0x77   :  { %v351_v41 = vunpack.i.l.bf16 %v464_v18 }
  0x79   :  { %v177_v60 = vsel %vm87_vm3, %v342_v39, %v351_v41  ;;  %v178_v62 = vsel %vm87_vm3, %v351_v41, %v341_v40 }
  0x7e   :  { %v466_v19 = vpop.permute.xlu2 %359 }
  0x7f   :  { %v362_v46 = vunpack.i.h.bf16 %v466_v19  ;;  %v361_v51 = vunpack.i.l.bf16 %v466_v19 }
  0x86   :  { %v468_v20 = vpop.permute.xlu1 %334  ;;  %v472_v26 = vpop.permute.xlu2 %374 }
  0x87   :  { %v325_v21 = vpop.permute.xlu0 %324  ;;  %v337_v42 = vunpack.i.h.bf16 %v468_v20  ;;  %v336_v47 = vunpack.i.l.bf16 %v468_v20 }
  0x88   :  { %v327_v24 = vunpack.i.h.bf16 %v325_v21  ;;  %v326_v25 = vunpack.i.l.bf16 %v325_v21  ;;  %v377_v21 = vunpack.i.h.bf16 %v472_v26 }
  0x8e   :  { %v470_v22 = vpop.permute.xlu1 %354  ;;  %v482_v36 = vpop.permute.xlu2 %389 }
  0x8f   :  { %v330_v23 = vpop.permute.xlu0 %329  ;;  %v357_v43 = vunpack.i.h.bf16 %v470_v22  ;;  %v356_v45 = vunpack.i.l.bf16 %v470_v22 }
  0x90   :  { %v331_v27 = vunpack.i.l.bf16 %v330_v23  ;;  %v332_v44 = vunpack.i.h.bf16 %v330_v23  ;;  %v391_v23 = vunpack.i.l.bf16 %v482_v36 }
  0x92   :  { %v193_v28 = vsel %vm109_vm0, %v327_v24, %v331_v27  ;;  %v194_v29 = vsel %vm109_vm0, %v331_v27, %v326_v25  ;;  %v376_v24 = vunpack.i.l.bf16 %v472_v26 }
  0x93   :  { %v216_v30 = vpack.c.bf16 %v193_v28, %v193_v28  ;;  %v217_v31 = vpack.c.bf16 %v194_v29, %v194_v29  ;;  %v137_v28 = vsel %vm32_vm7, %v377_v21, %v391_v23 }
  0x94   :  { %v197_v41 = vsel %vm114_vm5, %v444_v4, %v137_v28  ;;  %v352_v4 = vunpack.i.h.bf16 %v464_v18 }
  0x95   :  { %v236_v32 = vsel %vm228_vm1, %v216_v30, 0  ;;  %v239_v33 = vsel %vm228_vm1, %v217_v31, 0  ;;  %v138_v31 = vsel %vm32_vm7, %v391_v23, %v376_v24 }
  0x96   :  { %272 = vmatpush.bf16.msra.mxu2 %v236_v32  ;;  %285 = vmatpush.bf16.msra.mxu3 %v239_v33  ;;  %v478_v34 = vpop.permute.xlu1 %364  ;;  %v62_v10 = vpop.permute.xlu2 %61 }
  0x97   :  { %v480_v35 = vpop.permute.xlu0 %344  ;;  %v366_v38 = vunpack.i.l.bf16 %v478_v34 }
  0x98   :  { %v346_v37 = vunpack.i.l.bf16 %v480_v35  ;;  %v347_v39 = vunpack.i.h.bf16 %v480_v35 }
  0x99   :  { %v169_v50 = vsel %vm76_vm2, %v357_v43, %v366_v38  ;;  %v170_v55 = vsel %vm76_vm2, %v366_v38, %v356_v45 }
  0x9a   :  { %v161_v49 = vsel %vm65_vm4, %v337_v42, %v346_v37  ;;  %v162_v59 = vsel %vm65_vm4, %v346_v37, %v336_v47 }
  0x9b   :  { %v201_v61 = vsel %vm114_vm5, %v161_v49, %v169_v50  ;;  %v202_v7 = vsel %vm114_vm5, %v162_v59, %v170_v55  ;;  %v198_v50 = vsel %vm114_vm5, %v449_v9, %v138_v31  ;;  %v66_v55 = vsel %vm65_vm4, %v347_v39, %v62_v10  ;;  %v205_v9 = vld [vmem:[%s610_s1] sm:$0xf] }
  0x9e   :  { %v106_v48 = vpop.permute.xlu1 %105 }
  0x9f   :  { %v497_v52 = vpop.permute.xlu0 %369  ;;  %v110_v53 = vsel %vm109_vm0, %v332_v44, %v106_v48  ;;  %v111_v54 = vsel %vm109_vm0, %v106_v48, %v326_v25  ;;  %v95_v25 = vpop.permute.xlu2 %94 }
  0xa0   :  { %v371_v56 = vunpack.i.l.bf16 %v497_v52  ;;  %v214_v57 = vpack.c.bf16 %v110_v53, %v110_v53  ;;  %v215_v58 = vpack.c.bf16 %v111_v54, %v111_v54  ;;  %v372_v48 = vunpack.i.h.bf16 %v497_v52 }
  0xa1   :  { %v100_v18 = vsel %vm98_vm6, %v95_v25, %v361_v51 }
  0xa2   :  { %v230_v63 = vsel %vm228_vm1, %v214_v57, 0  ;;  %v233_v0 = vsel %vm228_vm1, %v215_v58, 0  ;;  %v185_v1 = vsel %vm98_vm6, %v362_v46, %v371_v56  ;;  %v186_v5 = vsel %vm98_vm6, %v371_v56, %v361_v51 }
  0xa3   :  { %246 = vmatpush.bf16.msra.mxu0 %v230_v63  ;;  %259 = vmatpush.bf16.msra.mxu1 %v233_v0  ;;  %v203_v6 = vsel %vm114_vm5, %v177_v60, %v185_v1  ;;  %v204_v8 = vsel %vm114_vm5, %v178_v62, %v186_v5  ;;  %v67_v56 = vsel %vm65_vm4, %v62_v10, %v336_v47  ;;  %v367_v57 = vunpack.i.h.bf16 %v478_v34 }
  0xa4   :  { %v212_v11 = vpack.c.bf16 %v203_v6, %v201_v61  ;;  %v213_v12 = vpack.c.bf16 %v204_v8, %v202_v7  ;;  %v99_v34 = vsel %vm98_vm6, %v372_v48, %v95_v25  ;;  %v392_v5 = vunpack.i.h.bf16 %v482_v36 }
  0xa6   :  { %273 = vmatpush.bf16.msra.mxu2 %v212_v11  ;;  %286 = vmatpush.bf16.msra.mxu3 %v213_v12  ;;  %v522_v13 = vpop.permute.xlu1 %384 }
  0xa7   :  { %v524_v14 = vpop.permute.xlu0 %379  ;;  %v387_v29 = vunpack.i.h.bf16 %v522_v13  ;;  %v386_v37 = vunpack.i.l.bf16 %v522_v13  ;;  %v400_v47 = vpop.permute.xlu2 %399 }
  0xa8   :  { %v382_v32 = vunpack.i.h.bf16 %v524_v14  ;;  %v381_v33 = vunpack.i.l.bf16 %v524_v14  ;;  %v401_v62 = vunpack.i.l.bf16 %v400_v47  ;;  %v402_v1 = vunpack.i.h.bf16 %v400_v47 }
  0xaa   :  { %v56_v11 = vsel %vm54_vm9, %v402_v1, %v386_v37 }
  0xae   :  { %v152_v27 = vpop.permute.xlu1 %151 }
  0xaf   :  { %v395_v30 = vpop.permute.xlu0 %394  ;;  %v153_v42 = vsel %vm54_vm9, %v387_v29, %v152_v27  ;;  %v154_v43 = vsel %vm54_vm9, %v152_v27, %v386_v37 }
  0xb0   :  { %v396_v38 = vunpack.i.l.bf16 %v395_v30  ;;  %v397_v22 = vunpack.i.h.bf16 %v395_v30 }
  0xb2   :  { %v145_v44 = vsel %vm43_vm8, %v382_v32, %v396_v38  ;;  %v146_v46 = vsel %vm43_vm8, %v396_v38, %v381_v33 }
  0xb3   :  { %v199_v49 = vsel %vm114_vm5, %v145_v44, %v153_v42  ;;  %v200_v35 = vsel %vm114_vm5, %v146_v46, %v154_v43 }
  0xb4   :  { %v208_v53 = vpack.c.bf16 %v199_v49, %v197_v41  ;;  %v209_v54 = vpack.c.bf16 %v200_v35, %v198_v50 }
  0xb6   :  { %274 = vmatpush.bf16.msra.mxu2 %v208_v53  ;;  %287 = vmatpush.bf16.msra.mxu3 %v209_v54  ;;  %v84_v52 = vpop.permute.xlu1 %83 }
  0xb7   :  { %v73_v58 = vpop.permute.xlu0 %72  ;;  %v88_v59 = vsel %vm87_vm3, %v352_v4, %v84_v52  ;;  %v89_v20 = vsel %vm87_vm3, %v84_v52, %v341_v40 }
  0xb8   :  { %v77_v60 = vsel %vm76_vm2, %v367_v57, %v73_v58  ;;  %v78_v61 = vsel %vm76_vm2, %v73_v58, %v356_v45  ;;  %v121_v19 = vsel %vm114_vm5, %v88_v59, %v99_v34  ;;  %v122_v51 = vsel %vm114_vm5, %v89_v20, %v100_v18 }
  0xb9   :  { %309 = vmatmul.msk.bf16.vlgmr.msra.gmra.mxu2 %vm224_vm10, %v205_v9  ;;  %310 = vmatmul.msk.bf16.vlgmr.msra.gmra.mxu3 %vm224_vm10, %v205_v9  ;;  %v119_v17 = vsel %vm114_vm5, %v66_v55, %v77_v60  ;;  %v120_v40 = vsel %vm114_vm5, %v67_v56, %v78_v61  ;;  %v55_v45 = vsel %vm54_vm9, %v401_v62, %v402_v1 }
  0xba   :  { %v210_v63 = vpack.c.bf16 %v121_v19, %v119_v17  ;;  %v211_v0 = vpack.c.bf16 %v122_v51, %v120_v40 }
  0xbc   :  { %247 = vmatpush.bf16.msra.mxu0 %v210_v63  ;;  %260 = vmatpush.bf16.msra.mxu1 %v211_v0 }
  0xbe   :  { %v40_v6 = vpop.permute.xlu1 %39 }
  0xbf   :  { %v29_v7 = vpop.permute.xlu0 %28  ;;  %v44_v8 = vsel %vm43_vm8, %v397_v22, %v40_v6  ;;  %v45_v10 = vsel %vm43_vm8, %v40_v6, %v381_v33 }
  0xc0   :  { %v33_v12 = vsel %vm32_vm7, %v392_v5, %v29_v7  ;;  %v34_v13 = vsel %vm32_vm7, %v29_v7, %v376_v24  ;;  %v117_v14 = vsel %vm114_vm5, %v44_v8, %v55_v45  ;;  %v118_v15 = vsel %vm114_vm5, %v45_v10, %v56_v11 }
  0xc1   :  { %v115_v36 = vsel %vm114_vm5, %v440_v2, %v33_v12  ;;  %v116_v16 = vsel %vm114_vm5, %v442_v3, %v34_v13 }
  0xc2   :  { %v206_v21 = vpack.c.bf16 %v117_v14, %v115_v36  ;;  %v207_v23 = vpack.c.bf16 %v118_v15, %v116_v16 }
  0xc4   :  { %248 = vmatpush.bf16.msra.mxu0 %v206_v21  ;;  %261 = vmatpush.bf16.msra.mxu1 %v207_v23 }
  0xc7   :  { %307 = vmatmul.msk.bf16.vlgmr.msra.gmra.mxu0 %vm224_vm10, %v205_v9  ;;  %308 = vmatmul.msk.bf16.vlgmr.msra.gmra.mxu1 %vm224_vm10, %v205_v9  ;;  %v222_v26 = vpop.permute.xlu0 %221 }
 0x13c   :  { %v276_v24 = vpop.f32.mrf.mxu2  ;;  %v289_v25 = vpop.f32.mrf.mxu3 }
 0x13d   :  { %v277_v27 = vadd.f32 %v276_v24, %v222_v26  ;;  %v290_v28 = vadd.f32 %v289_v25, %v222_v26 }
 0x13f   :  { %v295_v29 = vmax.f32 %v277_v27, 0.0  ;;  %v296_v30 = vmax.f32 %v290_v28, 0.0 }
 0x141   :  { %311 = vst [vmem:[%s611_s3 + $0x10] sm:$0xff] %v295_v29 }
 0x142   :  { %312 = vst [vmem:[%s611_s3 + $0x18] sm:$0xff] %v296_v30 }
 0x144   :  { %v250_v2 = vpop.f32.mrf.mxu0  ;;  %v263_v3 = vpop.f32.mrf.mxu1 }
 0x145   :  { %v251_v31 = vadd.f32 %v250_v2, %v222_v26  ;;  %v264_v32 = vadd.f32 %v263_v3, %v222_v26  ;;  %v278_v33 = vpop.f32.mrf.mxu2  ;;  %v291_v37 = vpop.f32.mrf.mxu3 }
 0x147   :  { %v293_v38 = vmax.f32 %v251_v31, 0.0  ;;  %v294_v39 = vmax.f32 %v264_v32, 0.0 }
 0x149   :  { %297 = vst [vmem:[%s611_s3] sm:$0xff] %v293_v38 }
 0x14a   :  { %298 = vst [vmem:[%s611_s3 + $0x8] sm:$0xff] %v294_v39 }
 0x14c   :  { %v252_v41 = vpop.f32.mrf.mxu0  ;;  %v265_v42 = vpop.f32.mrf.mxu1 }

</bundles_post_ra>
